<compile_context>
chip_gen: v6e
topology: v6e:2x2x1
jax: 0.10.0
libtpu: 0.0.40
codegen_flags: <defaults>
</compile_context>

<pallas_src>
import functools

import jax
import jax.numpy as jnp
from jax.experimental import pallas as pl
from jax.experimental.pallas import tpu as pltpu


def _instance_renorm_kernel(x_ref, stats_ref, o_ref, *, eps, n, hw_pad):
    """x_ref: (TM, HW_pad) lane-dense tile; stats_ref: (TM, 2) = [mean, std]."""
    x = x_ref[...].astype(jnp.float32)

    masked = hw_pad != n
    if masked:
        lane = jax.lax.broadcasted_iota(jnp.int32, x.shape, dimension=1)
        valid = lane < n
        xs = jnp.where(valid, x, 0.0)
    else:
        xs = x

    # two-pass per-row mean / unbiased variance (robust to large offsets)
    mu = jnp.sum(xs, axis=-1, keepdims=True) * (1.0 / n)          # (TM, 1)
    d = xs - mu
    if masked:
        d = jnp.where(valid, d, 0.0)
    # n == 1 is degenerate (torch.std would give NaN); guard the constant.
    inv_nm1 = 1.0 / (n - 1) if n > 1 else 0.0
    var = jnp.sum(d * d, axis=-1, keepdims=True) * inv_nm1        # (TM, 1)
    sigma = jnp.sqrt(var)
    inv_sigma = pl.reciprocal(sigma + eps, approx=True)           # EUP, 1/row

    st = stats_ref[...]                                           # (TM, 2) f32
    tgt_mean = st[:, 0:1]
    tgt_std = st[:, 1:2]
    scale = tgt_std * inv_sigma                                   # (TM, 1)
    bias = tgt_mean - mu * scale                                  # (TM, 1)

    # fused affine output pass: y = x * scale + bias
    o_ref[...] = (x * scale + bias).astype(o_ref.dtype)


def _vmem_budgets():
    """(per-step VMEM working-set budget, scoped vmem_limit ceiling), generation
    aware: v5e/v6e have 128 MiB physical VMEM, v7x only 64 MiB."""
    try:
        vmem_phys = pltpu.get_tpu_info().vmem_capacity_bytes
    except Exception:  # no TPU visible (e.g. interpret mode) -> be conservative
        vmem_phys = 64 << 20
    if vmem_phys > (64 << 20):          # v5e / v6e
        return 56 << 20, 64 << 20
    return 26 << 20, 40 << 20           # v7x or unknown


def _choose_rows(bc, hw_pad, itemsize, budget_bytes, n_cores=2, min_grid=8):
    """Pick TM = rows per grid step.

    Constraints: TM % 8 == 0 (sublane tiling); per-step working set within
    budget; grid >= min(min_grid, ceil(bc/8)) so pipelining stays alive and the
    parallel axis can shard across both v7x TCs.  Among valid TMs, minimize
    row-padding waste + per-step pipeline overhead + odd-grid TC imbalance.
    """
    # per-row footprint: 2x double-buffered input + 2x double-buffered output
    # tiles (native dtype) plus ~3 f32 working tiles inside the kernel body.
    footprint_per_row = hw_pad * (4 * itemsize + 12)
    tm_hi = max(8, min(budget_bytes // footprint_per_row,
                       pl.cdiv(bc, 8) * 8) // 8 * 8)
    target_grid = min(min_grid, pl.cdiv(bc, 8))

    best_tm, best_cost = 8, None
    for tm in range(8, tm_hi + 1, 8):
        grid = pl.cdiv(bc, tm)
        if grid < target_grid:
            continue
        pad_frac = (grid * tm - bc) / bc
        # ~0.35 us/step vs HBM time for in+out traffic of this step (~1.2 TB/s)
        overhead_frac = 0.42e6 / (2.0 * tm * hw_pad * itemsize)
        imbalance = (0.5 / grid) if (grid > 1 and grid % n_cores != 0) else 0.0
        cost = pad_frac + overhead_frac + imbalance
        if best_cost is None or cost < best_cost:
            best_tm, best_cost = tm, cost
    return best_tm


def instance_renorm(x, mean, std, eps=1e-5):
    """x: (B, C, H, W). mean/std: scalars or per-channel (C,) arrays."""
    B, C, H, W = x.shape
    BC, HW = B * C, H * W
    itemsize = x.dtype.itemsize

    # lane-dense layout: spatial extent on the lane axis, padded to 128 lanes
    hw_pad = max(128, pl.cdiv(HW, 128) * 128)
    x2d = x.reshape(BC, HW)
    if hw_pad != HW:
        x2d = jnp.pad(x2d, ((0, 0), (0, hw_pad - HW)))

    # per-instance target stats packed as one (BC, 2) f32 array: [mean, std]
    mean_c = jnp.broadcast_to(jnp.asarray(mean, jnp.float32).reshape(-1), (C,))
    std_c = jnp.broadcast_to(jnp.asarray(std, jnp.float32).reshape(-1), (C,))
    stats = jnp.stack([jnp.tile(mean_c, B), jnp.tile(std_c, B)], axis=-1)

    budget_bytes, vmem_ceiling = _vmem_budgets()
    tm = _choose_rows(BC, hw_pad, itemsize, budget_bytes)
    grid_n = pl.cdiv(BC, tm)
    bc_pad = grid_n * tm
    if bc_pad != BC:
        # pad rows are all-zero -> finite harmless output, sliced off below
        x2d = jnp.pad(x2d, ((0, bc_pad - BC), (0, 0)))
        stats = jnp.pad(stats, ((0, bc_pad - BC), (0, 0)))

    # scoped VMEM request from the real per-step footprint (+ headroom),
    # capped under the generation ceiling (64 MiB phys on v7x).
    footprint = tm * hw_pad * (4 * itemsize + 12) + (2 << 20)
    vmem_limit = int(min(max(footprint, 16 << 20), vmem_ceiling))

    kernel = functools.partial(
        _instance_renorm_kernel,
        eps=float(eps), n=int(HW), hw_pad=int(hw_pad),
    )

    out2d = pl.pallas_call(
        kernel,
        out_shape=jax.ShapeDtypeStruct((bc_pad, hw_pad), x.dtype),
        grid=(grid_n,),
        in_specs=[
            pl.BlockSpec((tm, hw_pad), lambda i: (i, 0)),   # x tile (TM rows)
            pl.BlockSpec((tm, 2), lambda i: (i, 0)),        # [mean, std] columns
        ],
        out_specs=pl.BlockSpec((tm, hw_pad), lambda i: (i, 0)),
        compiler_params=pltpu.CompilerParams(
            dimension_semantics=("parallel",),
            vmem_limit_bytes=vmem_limit,
        ),
    )(x2d, stats)

    return out2d[:BC, :HW].reshape(B, C, H, W)


class InstanceReNorm:
    """re normalize input with given mean and std-dev value."""

    def __init__(self, eps=1e-5):
        self.eps = eps

    def __call__(self, x, mean, std):
        return instance_renorm(x, mean, std, self.eps)


def _reference(x, mean, std, eps):
    # pure-JAX reference (unbiased std, eps added to sigma)
    B, C, H, W = x.shape
    xf = x.astype(jnp.float32).reshape(B, C, -1)
    mu = xf.mean(axis=-1, keepdims=True)
    diff = xf - mu
    sigma = jnp.sqrt(jnp.sum(diff * diff, axis=-1, keepdims=True) / (H * W - 1))
    m = jnp.broadcast_to(jnp.asarray(mean, jnp.float32).reshape(-1), (C,)).reshape(1, C, 1)
    s = jnp.broadcast_to(jnp.asarray(std, jnp.float32).reshape(-1), (C,)).reshape(1, C, 1)
    y = diff / (sigma + eps) * s + m
    return y.reshape(B, C, H, W).astype(x.dtype)


if __name__ == "__main__":
    key = jax.random.PRNGKey(0)
    B, C, H, W = 2, 4, 16, 16
    kx, _ = jax.random.split(key)
    x = jax.random.normal(kx, (B, C, H, W), dtype=jnp.float32) * 3.0 + 1.5
    mean = jnp.linspace(-1.0, 1.0, C, dtype=jnp.float32)
    std = jnp.linspace(0.5, 2.0, C, dtype=jnp.float32)

    mod = InstanceReNorm(eps=1e-5)
    out = jax.block_until_ready(mod(x, mean, std))
    ref = _reference(x, mean, std, 1e-5)
    assert out.shape == x.shape and out.dtype == x.dtype
    assert jnp.allclose(out, ref, atol=5e-3, rtol=5e-3)

    # unaligned spatial extent (7x7 -> lane-padded to 128, masked reductions),
    # scalar mean/std targets
    x2 = jax.random.normal(jax.random.PRNGKey(1), (2, 4, 7, 7),
                           dtype=jnp.float32) * 2.0 - 0.7
    out2 = jax.block_until_ready(mod(x2, 0.5, 1.25))
    ref2 = _reference(x2, 0.5, 1.25, 1e-5)
    assert out2.shape == x2.shape and out2.dtype == x2.dtype
    assert jnp.allclose(out2, ref2, atol=5e-3, rtol=5e-3)

    print("KERNEL_OK")
</pallas_src>

<mosaic_0001>
module attributes {stable_mosaic.version = 11 : i64} {
  func.func @_instance_renorm_kernel(%arg0: i32, %arg1: memref<8x256xf32, #tpu.memory_space<vmem>>, %arg2: memref<8x2xf32, #tpu.memory_space<vmem>>, %arg3: memref<8x256xf32, #tpu.memory_space<vmem>>) attributes {dimension_semantics = [#tpu.dimension_semantics<parallel>], iteration_bounds = array<i64: 1>, scalar_prefetch = 0 : i64, scratch_operands = 0 : i64, tpu.core_type = #tpu.core_type<tc>, window_params = [{transform_indices = @transform_0, window_bounds = array<i64: 8, 256>}, {transform_indices = @transform_1, window_bounds = array<i64: 8, 2>}, {transform_indices = @transform_2, window_bounds = array<i64: 8, 256>}]} {
    %c0 = arith.constant 0 : index
    %c0_0 = arith.constant 0 : index
    %0 = vector.load %arg1[%c0, %c0_0] : memref<8x256xf32, #tpu.memory_space<vmem>>, vector<8x256xf32>
    %cst = arith.constant dense<0.000000e+00> : vector<8xf32>
    %1 = vector.multi_reduction <add>, %0, %cst [1] : vector<8x256xf32> to vector<8xf32>
    %2 = vector.shape_cast %1 : vector<8xf32> to vector<8x1xf32>
    %cst_1 = arith.constant 3.906250e-03 : f32
    %3 = vector.broadcast %cst_1 : f32 to vector<8x1xf32>
    %4 = arith.mulf %2, %3 : vector<8x1xf32>
    %5 = vector.broadcast %4 : vector<8x1xf32> to vector<8x256xf32>
    %6 = arith.subf %0, %5 : vector<8x256xf32>
    %7 = arith.mulf %6, %6 : vector<8x256xf32>
    %cst_2 = arith.constant dense<0.000000e+00> : vector<8xf32>
    %8 = vector.multi_reduction <add>, %7, %cst_2 [1] : vector<8x256xf32> to vector<8xf32>
    %9 = vector.shape_cast %8 : vector<8xf32> to vector<8x1xf32>
    %cst_3 = arith.constant 0.00392156886 : f32
    %10 = vector.broadcast %cst_3 : f32 to vector<8x1xf32>
    %11 = arith.mulf %9, %10 : vector<8x1xf32>
    %12 = math.sqrt %11 : vector<8x1xf32>
    %cst_4 = arith.constant 9.99999974E-6 : f32
    %13 = vector.broadcast %cst_4 : f32 to vector<8x1xf32>
    %14 = arith.addf %12, %13 : vector<8x1xf32>
    %15 = tpu.reciprocal %14 {approx = true} : vector<8x1xf32> -> vector<8x1xf32>
    %c0_5 = arith.constant 0 : index
    %c0_6 = arith.constant 0 : index
    %16 = vector.load %arg2[%c0_5, %c0_6] : memref<8x2xf32, #tpu.memory_space<vmem>>, vector<8x2xf32>
    %17 = vector.extract_strided_slice %16 {offsets = [0, 0], sizes = [8, 1], strides = [1, 1]} : vector<8x2xf32> to vector<8x1xf32>
    %18 = vector.extract_strided_slice %16 {offsets = [0, 1], sizes = [8, 1], strides = [1, 1]} : vector<8x2xf32> to vector<8x1xf32>
    %19 = arith.mulf %18, %15 : vector<8x1xf32>
    %20 = arith.mulf %4, %19 : vector<8x1xf32>
    %21 = arith.subf %17, %20 : vector<8x1xf32>
    %22 = vector.broadcast %19 : vector<8x1xf32> to vector<8x256xf32>
    %23 = arith.mulf %0, %22 : vector<8x256xf32>
    %24 = vector.broadcast %21 : vector<8x1xf32> to vector<8x256xf32>
    %25 = arith.addf %23, %24 : vector<8x256xf32>
    %c0_7 = arith.constant 0 : index
    %c0_8 = arith.constant 0 : index
    %26 = vector.load %arg3[%c0_7, %c0_8] : memref<8x256xf32, #tpu.memory_space<vmem>>, vector<8x256xf32>
    tpu.vector_store %arg3[%c0_7, %c0_8], %25 {strides = array<i32>} : memref<8x256xf32, #tpu.memory_space<vmem>>, vector<8x256xf32>,
    return
  }
  func.func @transform_0(%arg0: i32) -> (i32, i32) {
    %c0_i32 = arith.constant 0 : i32
    %c0_i32_0 = arith.constant 0 : i32
    return %arg0, %c0_i32 : i32, i32
  }
  func.func @transform_1(%arg0: i32) -> (i32, i32) {
    %c0_i32 = arith.constant 0 : i32
    %c0_i32_0 = arith.constant 0 : i32
    return %arg0, %c0_i32 : i32, i32
  }
  func.func @transform_2(%arg0: i32) -> (i32, i32) {
    %c0_i32 = arith.constant 0 : i32
    %c0_i32_0 = arith.constant 0 : i32
    return %arg0, %c0_i32 : i32, i32
  }
}

</mosaic_0001>

<bundles_post_ra>
// kernel: tpu_custom_call.1
= control target key start
LH: loop header
LB: loop body
LE: loop exit
PB: predicated region body
PF: predicated region fallthrough
CT: control target
= control target key end

     0   :  { %7 = vsyncpa [#allocation3], 0  ;;  %s170_s0 = inlined_call_operand.hbm [shape: f32[8,256], index: 0, kind: input, shape index: {}]   ;;  %s171_s1 = inlined_call_operand.vmem [shape: f32[8,2], index: 1, kind: input, shape index: {}]   ;;  %s172_s2 = inlined_call_operand.hbm [shape: f32[8,256], index: 2, kind: output, shape index: {}]  }
   0x1   :  { %8 = vsyncpa [#allocation4], 0  ;;  %s141_s9 = smov [#allocation2]  }
   0x2   :  { %s15_s10 = sshll.u32 %s141_s9, 4  ;;  %s16_s10 = int_to_ptr.vmem [resolvable:$true] %s15_s10 }
   0x3   :  { %s105_s11 = scalar_lea.vmem %s16_s10, 256  ;;  %p110_p1 = scmp.lt.s32.totalorder %s16_s10, %s16_s10 }
   0x4   :  { %p106_p0 = scmp.ne.s32.totalorder %s16_s10, %s105_s11  ;;  %p111_p2 = scmp.lt.s32.totalorder %s105_s11, %s105_s11 }
   0x6   :  { %p112_p3 = por %p111_p2, %p110_p1 }
   0x8   :  { %p113_p4 = pnand %p112_p3, %p106_p0 }
   0xa   :  { %116 = shalt.err (!%p113_p4)
}
   0xb   :  { %18 = dma.hbm_to_vmem [thread:$0]  %s170_s0, 256, %s16_s10, [#allocation3]  }
   0xc   :  { %137 = dma.done.wait [#allocation3], 256  }
   0xd   :  { %138 = vsyncadd [#allocation3], 4294967040  ;;  %v24_v0 = vld [vmem:[#allocation2] sm:$0xff]  ;;  %v25_v1 = vld [vmem:[#allocation2 + $0x8] sm:$0xff]  ;;  %v142_v10 = vmov 1   ;;  %v143_v19 = vmov 0  }
   0xe   :  { %v26_v2 = vadd.f32 %v25_v1, %v24_v0  ;;  %91 = vset.pattern.permute.xlu1 %v142_v10  ;;  %92 = vset.pattern.permute.xlu0 %v143_v19  ;;  %v47_v20 = vld [vmem:[%s171_s1] sm:$0xff]  ;;  %s144_s15 = smov 127   ;;  %s145_s16 = smov [#allocation5]  }
   0xf   :  { %s77_s17 = sshll.u32 %s145_s16, 4  ;;  %s78_s17 = int_to_ptr.vmem [resolvable:$true] %s77_s17 }
  0x10   :  { %27 = vadd.xlane.f32.xlu0 %v26_v2  ;;  %s117_s1 = scalar_lea.vmem %s78_s17, 256  ;;  %p122_p6 = scmp.lt.s32.totalorder %s78_s17, %s78_s17 }
  0x11   :  { %p118_p5 = scmp.ne.s32.totalorder %s78_s17, %s117_s1  ;;  %p123_p7 = scmp.lt.s32.totalorder %s117_s1, %s117_s1 }
  0x13   :  { %p124_p8 = por %p123_p7, %p122_p6 }
  0x15   :  { %p125_p9 = pnand %p124_p8, %p118_p5 }
  0x99   :  { %v28_v3 = vpop.xlane.xlu0 %27 }
  0x9a   :  { %v29_v4 = vmul.f32 0.00390625, %v28_v3 }
  0x9c   :  { %v30_v5 = vsub.f32 %v24_v0, %v29_v4  ;;  %v31_v6 = vsub.f32 %v25_v1, %v29_v4 }
  0x9e   :  { %v32_v7 = vmul.f32 %v30_v5, %v30_v5  ;;  %v33_v8 = vmul.f32 %v31_v6, %v31_v6 }
  0xa0   :  { %v34_v9 = vadd.f32 %v33_v8, %v32_v7 }
  0xa2   :  { %35 = vadd.xlane.f32.xlu0 %v34_v9 }
 0x12b   :  { %v36_v11 = vpop.xlane.xlu0 %35 }
 0x12c   :  { %v37_v12 = vmul.f32 0.003921569, %v36_v11 }
 0x12e   :  { %93 = vrsqrt.f32 %v37_v12  ;;  %vm40_vm0 = vcmp.eq.f32.partialorder %v37_v12, inf  ;;  %v43_v15 = vand.u32 2147483648, %v37_v12  ;;  %vm42_vm1 = vcmp.eq.f32.partialorder %v37_v12, 0.0 }
 0x13b   :  { %v94_v13 = vpop.eup %93 }
 0x13c   :  { %v39_v14 = vmul.f32 %v94_v13, %v37_v12 }
 0x13e   :  { %v41_v16 = vsel %vm40_vm0, %v37_v12, %v39_v14 }
 0x13f   :  { %v44_v17 = vsel %vm42_vm1, %v43_v15, %v41_v16 }
 0x140   :  { %v45_v18 = vadd.f32 1e-05, %v44_v17 }
 0x142   :  { %95 = vrcp.f32 %v45_v18 }
 0x14f   :  { %v96_v21 = vpop.eup %95 }
 0x150   :  { %v48_v22 = vmul.f32 %v96_v21, %v47_v20 }
 0x152   :  { %v49_v23 = vmul.f32 %v48_v22, %v29_v4 }
 0x154   :  { %51 = vrot.lane.b32.xlu1 %v49_v23, %s144_s15 }
 0x158   :  { %57 = vperm.xlu1 %91, %v48_v22  }
 0x1c6   :  { %v52_v24 = vpop.permute.xlu1 %51 }
 0x1c7   :  { %v54_v25 = vsub.f32 %v47_v20, %v52_v24 }
 0x1c9   :  { %64 = vperm.xlu0 %92, %v54_v25  }
 0x1d3   :  { %v58_v26 = vpop.permute.xlu1 %57 }
 0x1d4   :  { %v60_v27 = vmul.f32 %v58_v26, %v24_v0  ;;  %v61_v28 = vmul.f32 %v58_v26, %v25_v1 }
 0x244   :  { %v65_v29 = vpop.permute.xlu0 %64 }
 0x245   :  { %v67_v30 = vadd.f32 %v65_v29, %v60_v27  ;;  %v68_v31 = vadd.f32 %v65_v29, %v61_v28 }
 0x247   :  { %69 = vst [vmem:[#allocation5] sm:$0xff] %v67_v30  ;;  %70 = vst [vmem:[#allocation5 + $0x8] sm:$0xff] %v68_v31 }
 0x248   :  { %128 = shalt.err (!%p125_p9)
}
 0x249   :  { %80 = dma.vmem_to_hbm [thread:$0]  %s78_s17, 256, %s172_s2, [#allocation4]  }
 0x24a   :  { %139 = dma.done.wait [#allocation4], 256  }
 0x24b   :  { %140 = vsyncadd [#allocation4], 4294967040 }
 0x24c   :  { %84 = vsyncpa [#allocation3], 1 }
 0x24d   :  { %85 = vsyncpa [#allocation4], 1 }

</bundles_post_ra>
